<compile_context>
chip_gen: v7x
topology: tpu7x:2x2x1
jax: 0.10.0
libtpu: 0.0.40
codegen_flags: <defaults>
</compile_context>

<pallas_src>
import jax
import jax.numpy as jnp
from jax.experimental import pallas as pl
from jax.experimental.pallas import tpu as pltpu

IN_FEATURES = 43

# Batch rows per grid step.  16384 rows ~ 2.9 MiB of (lane-padded) input per
# step; double-buffered in+out buffers ~ 34 MiB VMEM.  Sweep 8192..32768 on
# v5e/v6e (raise vmem_limit accordingly); keep <= 16384 on v7x (64 MiB VMEM).
TILE_B = 16384


def lr_kernel(x_ref, w_ref, b_ref, o_ref):
    # x_ref: (tile, 43)  VMEM input tile (partial last tile padded by Pallas)
    # w_ref: (43, 1)     VMEM weight column (constant index_map -> resident)
    # b_ref: (1, 1)      SMEM scalar bias
    # o_ref: (tile, 1)   VMEM output tile
    x = x_ref[...].astype(jnp.float32)          # x.to(torch.float32)
    w = w_ref[...].astype(jnp.float32)
    # MXU contraction over K=43 (Mosaic masks the lane padding); avoids the
    # XLU-bound cross-lane reduce of the previous version.
    z = jnp.dot(x, w, preferred_element_type=jnp.float32)   # (tile, 1)
    z = z + b_ref[0, 0]                          # scalar bias from SMEM
    o_ref[...] = jax.nn.sigmoid(z).astype(o_ref.dtype)      # nn.Sigmoid()


def lr_forward(x, w, b, *, tile_b=TILE_B):
    """sigmoid(x @ w.T + b); x: (B, 43) (f32 or bf16), w: (1, 43), b: (1,) or (1, 1).

    Returns (B, 1) float32, matching `LR.forward`. No padding copies of x are
    made: ragged batches are handled via partial blocks on the last grid step.
    """
    B, K = x.shape
    assert K == IN_FEATURES, f"expected {IN_FEATURES} input features, got {K}"

    # Clamp the tile for tiny batches (block dim == full array dim is always
    # legal); otherwise keep tile_b (multiple of 8) and let the last block be
    # a partial block.
    tile = int(min(tile_b, B))
    grid = (pl.cdiv(B, tile),)

    w_col = w.astype(jnp.float32).reshape(IN_FEATURES, 1)
    b_s = b.astype(jnp.float32).reshape(1, 1)

    # Double-buffered input (tile x 512 B after 43->128 lane padding) +
    # double-buffered output (also lane-padded) + headroom.
    vmem_limit = min(64 * 1024 * 1024, 4 * tile * 512 + (8 * 1024 * 1024))

    out = pl.pallas_call(
        lr_kernel,
        out_shape=jax.ShapeDtypeStruct((B, 1), jnp.float32),
        grid=grid,
        in_specs=[
            pl.BlockSpec((tile, K), lambda i: (i, 0)),
            pl.BlockSpec((IN_FEATURES, 1), lambda i: (0, 0)),
            pl.BlockSpec(memory_space=pltpu.MemorySpace.SMEM),
        ],
        out_specs=pl.BlockSpec((tile, 1), lambda i: (i, 0)),
        compiler_params=pltpu.CompilerParams(
            # Independent batch tiles -> both TensorCores on v7x; harmless on
            # single-TC v5e/v6e.
            dimension_semantics=("parallel",),
            vmem_limit_bytes=vmem_limit,
        ),
    )(x, w_col, b_s)

    return out


if __name__ == "__main__":
    key = jax.random.PRNGKey(0)
    k_x, k_w, k_b = jax.random.split(key, 3)

    batch = 200  # small demo batch; kernel clamps/tiles internally

    # nn.Linear-style init: U(-1/sqrt(in_features), 1/sqrt(in_features)).
    bound = 1.0 / float(IN_FEATURES) ** 0.5
    w = jax.random.uniform(k_w, (1, IN_FEATURES), jnp.float32, -bound, bound)
    b = jax.random.uniform(k_b, (1, 1), jnp.float32, -bound, bound)
    x = jax.random.normal(k_x, (batch, IN_FEATURES), jnp.float32)

    out = lr_forward(x, w, b)
    jax.block_until_ready(out)

    ref = jax.nn.sigmoid(jnp.sum(x * w, axis=-1, keepdims=True) + b)
    assert out.shape == (batch, 1)
    assert jnp.allclose(out, ref, atol=1e-4, rtol=1e-4)

    # Also exercise the multi-step grid with a ragged final tile (no padding
    # copies): 4 blocks of 64 rows over a 200-row batch.
    out_ragged = lr_forward(x, w, b, tile_b=64)
    jax.block_until_ready(out_ragged)
    assert jnp.allclose(out_ragged, ref, atol=1e-4, rtol=1e-4)

    print("KERNEL_OK")
</pallas_src>

<mosaic_0001>
module attributes {stable_mosaic.version = 11 : i64} {
  func.func @lr_kernel(%arg0: i32, %arg1: memref<200x43xf32, #tpu.memory_space<vmem>>, %arg2: memref<43x1xf32, #tpu.memory_space<vmem>>, %arg3: memref<1x1xf32, #tpu.memory_space<smem>>, %arg4: memref<200x1xf32, #tpu.memory_space<vmem>>) attributes {dimension_semantics = [#tpu.dimension_semantics<parallel>], iteration_bounds = array<i64: 1>, scalar_prefetch = 0 : i64, scratch_operands = 0 : i64, tpu.core_type = #tpu.core_type<tc>, window_params = [{transform_indices = @transform_0, window_bounds = array<i64: 200, 43>}, {pipeline_mode = #tpu.pipeline_mode<synchronous>, transform_indices = @transform_1, window_bounds = array<i64: 43, 1>}, {transform_indices = @transform_2, window_bounds = array<i64: 1, 1>}, {transform_indices = @transform_3, window_bounds = array<i64: 200, 1>}]} {
    %c0 = arith.constant 0 : index
    %c0_0 = arith.constant 0 : index
    %0 = vector.load %arg1[%c0, %c0_0] : memref<200x43xf32, #tpu.memory_space<vmem>>, vector<200x43xf32>
    %c0_1 = arith.constant 0 : index
    %c0_2 = arith.constant 0 : index
    %1 = vector.load %arg2[%c0_1, %c0_2] : memref<43x1xf32, #tpu.memory_space<vmem>>, vector<43x1xf32>
    %cst = arith.constant dense<0.000000e+00> : vector<200x1xf32>
    %2 = tpu.matmul %0, %1, %cst {dimension_numbers = #tpu.dot_dimension_numbers<[1], [0], [0], [1], [0, 0, 1, 1], [], []>} : vector<200x43xf32>, vector<43x1xf32>, vector<200x1xf32> -> vector<200x1xf32>
    %c0_3 = arith.constant 0 : index
    %c0_4 = arith.constant 0 : index
    %3 = memref.load %arg3[%c0_3, %c0_4] : memref<1x1xf32, #tpu.memory_space<smem>>
    %4 = vector.broadcast %3 : f32 to vector<200x1xf32>
    %5 = arith.addf %2, %4 : vector<200x1xf32>
    %6 = arith.negf %5 : vector<200x1xf32>
    %7 = math.exp %6 : vector<200x1xf32>
    %cst_5 = arith.constant 1.000000e+00 : f32
    %8 = vector.broadcast %cst_5 : f32 to vector<200x1xf32>
    %9 = arith.addf %8, %7 : vector<200x1xf32>
    %10 = arith.divf %8, %9 : vector<200x1xf32>
    %c0_6 = arith.constant 0 : index
    %c0_7 = arith.constant 0 : index
    %11 = vector.load %arg4[%c0_6, %c0_7] : memref<200x1xf32, #tpu.memory_space<vmem>>, vector<200x1xf32>
    tpu.vector_store %arg4[%c0_6, %c0_7], %10 {strides = array<i32>} : memref<200x1xf32, #tpu.memory_space<vmem>>, vector<200x1xf32>,
    return
  }
  func.func @transform_0(%arg0: i32) -> (i32, i32) {
    %c0_i32 = arith.constant 0 : i32
    %c0_i32_0 = arith.constant 0 : i32
    return %arg0, %c0_i32 : i32, i32
  }
  func.func @transform_1(%arg0: i32) -> (i32, i32) {
    %c0_i32 = arith.constant 0 : i32
    %c0_i32_0 = arith.constant 0 : i32
    %c0_i32_1 = arith.constant 0 : i32
    return %c0_i32, %c0_i32_0 : i32, i32
  }
  func.func @transform_2(%arg0: i32) -> (i32, i32) {
    %c0_i32 = arith.constant 0 : i32
    %c0_i32_0 = arith.constant 0 : i32
    %c0_i32_1 = arith.constant 0 : i32
    return %c0_i32, %c0_i32_0 : i32, i32
  }
  func.func @transform_3(%arg0: i32) -> (i32, i32) {
    %c0_i32 = arith.constant 0 : i32
    %c0_i32_0 = arith.constant 0 : i32
    return %arg0, %c0_i32 : i32, i32
  }
}

</mosaic_0001>

<bundles_post_ra>
// kernel: tpu_custom_call.1
= control target key start
LH: loop header
LB: loop body
LE: loop exit
PB: predicated region body
PF: predicated region fallthrough
CT: control target
= control target key end

     0   :  { %v787_v0 = vmov 0.0|0.0   ;;  %vm788_vm0 = vmmov 0   ;;  %v789_v6 = vmov 0.0   ;;  %vm124_vm1 = vcmask 1042432   ;;  %s1109_s1 = inlined_call_operand.vmem [shape: f32[43,1], index: 1, kind: input, shape index: {}]   ;;  %s1110_s0 = inlined_call_operand.vmem [shape: f32[200,43], index: 0, kind: input, shape index: {}]   ;;  %s1111_s2 = inlined_call_operand.<no memory space> [shape: f32[1,1], index: 2, kind: input, shape index: {}]   ;;  %s1112_s3 = inlined_call_operand.vmem [shape: f32[200,1], index: 3, kind: output, shape index: {}]  }
   0x1   :  { %667 = vmatprep.subr.bf16.mxu0 %v787_v0  ;;  %v40_v1 = vld [vmem:[%s1109_s1] sm:$0xff]  ;;  %v41_v2 = vld [vmem:[%s1109_s1 + $0x8] sm:$0xff]  ;;  %677 = vmatprep.subr.bf16.mxu1 %v787_v0  ;;  %v42_v3 = vld [vmem:[%s1109_s1 + $0x10] sm:$0xff]  ;;  %vm790_vm2 = vmmov 1   ;;  %vm48_vm4 = vcmask 351232   ;;  %v982_v36 = vstv %s1111_s2  ;;  %vm468_vm5 = vcmask 7168  }
   0x2   :  { %v668_v4 = vpack.c.bf16 %v41_v2, %v40_v1  ;;  %v43_v5 = vld [vmem:[%s1109_s1 + $0x18] sm:$0xff]  ;;  %592 = vmatprep.mubr.msk.f32.mxu0 %vm788_vm0, %v789_v6  ;;  %631 = vmatprep.mubr.msk.f32.mxu1 %vm788_vm0, %v789_v6  ;;  %v44_v8 = vld [vmem:[%s1109_s1 + $0x20] sm:$0xff]  ;;  %v45_v9 = vld [vmem:[%s1109_s1 + $0x28] sm:$0x7] }
   0x3   :  { %v671_v7 = vpack.c.bf16 %v43_v5, %v42_v3  ;;  %v674_v10 = vpack.c.bf16 %v45_v9, %v44_v8  ;;  %vm675_vm3 = vmpackc.low %vm124_vm1, %vm790_vm2  ;;  %v15_v11 = vld [vmem:[%s1110_s0] sm:$0xff]  ;;  %v28_v12 = vld [vmem:[%s1110_s0 + $0x68] sm:$0xff] }
   0x4   :  { %669 = vmatpush3.bf16.msra.mxu0 %v668_v4  ;;  %680 = vmatpush3.bf16.msra.mxu1 %v668_v4  ;;  %v16_v13 = vld [vmem:[%s1110_s0 + $0x8] sm:$0xff]  ;;  %v29_v14 = vld [vmem:[%s1110_s0 + $0x70] sm:$0xff]  ;;  %v30_v16 = vld [vmem:[%s1110_s0 + $0x78] sm:$0xff] }
   0x5   :  { %670 = vmatprep.subr.bf16.mxu0 %v787_v0  ;;  %678 = vmatprep.subr.bf16.mxu1 %v787_v0  ;;  %v17_v15 = vld [vmem:[%s1110_s0 + $0x10] sm:$0xff]  ;;  %v18_v17 = vld [vmem:[%s1110_s0 + $0x18] sm:$0xff]  ;;  %v31_v18 = vld [vmem:[%s1110_s0 + $0x80] sm:$0xff] }
   0x6   :  { %v19_v19 = vld [vmem:[%s1110_s0 + $0x20] sm:$0xff]  ;;  %v32_v20 = vld [vmem:[%s1110_s0 + $0x88] sm:$0xff]  ;;  %v33_v22 = vld [vmem:[%s1110_s0 + $0x90] sm:$0xff] }
   0x7   :  { %v20_v21 = vld [vmem:[%s1110_s0 + $0x28] sm:$0xff]  ;;  %v21_v23 = vld [vmem:[%s1110_s0 + $0x30] sm:$0xff]  ;;  %v34_v24 = vld [vmem:[%s1110_s0 + $0x98] sm:$0xff] }
   0x8   :  { %672 = vmatpush3.bf16.msra.mxu0 %v671_v7  ;;  %681 = vmatpush3.bf16.msra.mxu1 %v671_v7  ;;  %v22_v25 = vld [vmem:[%s1110_s0 + $0x38] sm:$0xff]  ;;  %v35_v26 = vld [vmem:[%s1110_s0 + $0xa0] sm:$0xff]  ;;  %v36_v28 = vld [vmem:[%s1110_s0 + $0xa8] sm:$0xff] }
   0x9   :  { %673 = vmatprep.subr.bf16.mxu0 %v787_v0  ;;  %679 = vmatprep.subr.bf16.mxu1 %v787_v0  ;;  %v23_v27 = vld [vmem:[%s1110_s0 + $0x40] sm:$0xff]  ;;  %v24_v29 = vld [vmem:[%s1110_s0 + $0x48] sm:$0xff]  ;;  %v37_v30 = vld [vmem:[%s1110_s0 + $0xb0] sm:$0xff] }
   0xa   :  { %v25_v31 = vld [vmem:[%s1110_s0 + $0x50] sm:$0xff]  ;;  %v38_v32 = vld [vmem:[%s1110_s0 + $0xb8] sm:$0xff]  ;;  %v39_v34 = vld [vmem:[%s1110_s0 + $0xc0] sm:$0xff] }
   0xb   :  { %v26_v33 = vld [vmem:[%s1110_s0 + $0x58] sm:$0xff]  ;;  %v27_v35 = vld [vmem:[%s1110_s0 + $0x60] sm:$0xff] }
   0xc   :  { %676 = vmatpush3.bf16.msk.msra.mxu0 %vm675_vm3, %v674_v10  ;;  %682 = vmatpush3.bf16.msk.msra.mxu1 %vm675_vm3, %v674_v10 }
   0xf   :  { %593 = vmatmul.mubr.msk.f32.vlgmr.msra.gmra.mrb[0].mxu0 %vm48_vm4, %v15_v11  ;;  %632 = vmatmul.mubr.msk.f32.vlgmr.msra.gmra.mrb[0].mxu1 %vm48_vm4, %v28_v12 }
  0x10   :  { %595 = vmatprep.mubr.msk.f32.mxu0 %vm788_vm0, %v789_v6  ;;  %634 = vmatprep.mubr.msk.f32.mxu1 %vm788_vm0, %v789_v6 }
  0x13   :  { %596 = vmatmul.mubr.msk.f32.gmra.mrb[2].mxu0 %vm48_vm4, %v16_v13  ;;  %635 = vmatmul.mubr.msk.f32.gmra.mrb[2].mxu1 %vm48_vm4, %v29_v14 }
  0x14   :  { %598 = vmatprep.mubr.msk.f32.mxu0 %vm788_vm0, %v789_v6  ;;  %637 = vmatprep.mubr.msk.f32.mxu1 %vm788_vm0, %v789_v6 }
  0x17   :  { %599 = vmatmul.mubr.msk.f32.gmra.mrb[4].mxu0 %vm48_vm4, %v17_v15  ;;  %638 = vmatmul.mubr.msk.f32.gmra.mrb[4].mxu1 %vm48_vm4, %v30_v16 }
  0x18   :  { %601 = vmatprep.mubr.msk.f32.mxu0 %vm788_vm0, %v789_v6  ;;  %640 = vmatprep.mubr.msk.f32.mxu1 %vm788_vm0, %v789_v6 }
  0x1b   :  { %602 = vmatmul.mubr.msk.f32.gmra.mrb[6].mxu0 %vm48_vm4, %v18_v17  ;;  %641 = vmatmul.mubr.msk.f32.gmra.mrb[6].mxu1 %vm48_vm4, %v31_v18 }
  0x1c   :  { %604 = vmatprep.mubr.msk.f32.mxu0 %vm788_vm0, %v789_v6  ;;  %643 = vmatprep.mubr.msk.f32.mxu1 %vm788_vm0, %v789_v6 }
  0x1f   :  { %605 = vmatmul.mubr.msk.f32.gmra.mrb[8].mxu0 %vm48_vm4, %v19_v19  ;;  %644 = vmatmul.mubr.msk.f32.gmra.mrb[8].mxu1 %vm48_vm4, %v32_v20 }
  0x20   :  { %607 = vmatprep.mubr.msk.f32.mxu0 %vm788_vm0, %v789_v6  ;;  %646 = vmatprep.mubr.msk.f32.mxu1 %vm788_vm0, %v789_v6 }
  0x23   :  { %608 = vmatmul.mubr.msk.f32.gmra.mrb[10].mxu0 %vm48_vm4, %v20_v21  ;;  %647 = vmatmul.mubr.msk.f32.gmra.mrb[10].mxu1 %vm48_vm4, %v33_v22 }
  0x24   :  { %610 = vmatprep.mubr.msk.f32.mxu0 %vm788_vm0, %v789_v6  ;;  %649 = vmatprep.mubr.msk.f32.mxu1 %vm788_vm0, %v789_v6 }
  0x27   :  { %611 = vmatmul.mubr.msk.f32.gmra.mrb[12].mxu0 %vm48_vm4, %v21_v23  ;;  %650 = vmatmul.mubr.msk.f32.gmra.mrb[12].mxu1 %vm48_vm4, %v34_v24 }
  0x28   :  { %613 = vmatprep.mubr.msk.f32.mxu0 %vm788_vm0, %v789_v6  ;;  %652 = vmatprep.mubr.msk.f32.mxu1 %vm788_vm0, %v789_v6 }
  0x2b   :  { %614 = vmatmul.mubr.msk.f32.gmra.mrb[14].mxu0 %vm48_vm4, %v22_v25  ;;  %653 = vmatmul.mubr.msk.f32.gmra.mrb[14].mxu1 %vm48_vm4, %v35_v26 }
  0x2c   :  { %616 = vmatprep.mubr.msk.f32.mxu0 %vm788_vm0, %v789_v6  ;;  %655 = vmatprep.mubr.msk.f32.mxu1 %vm788_vm0, %v789_v6 }
  0x2f   :  { %617 = vmatmul.mubr.msk.f32.gmra.mrb[16].mxu0 %vm48_vm4, %v23_v27  ;;  %656 = vmatmul.mubr.msk.f32.gmra.mrb[16].mxu1 %vm48_vm4, %v36_v28 }
  0x30   :  { %619 = vmatprep.mubr.msk.f32.mxu0 %vm788_vm0, %v789_v6  ;;  %658 = vmatprep.mubr.msk.f32.mxu1 %vm788_vm0, %v789_v6 }
  0x33   :  { %620 = vmatmul.mubr.msk.f32.gmra.mrb[18].mxu0 %vm48_vm4, %v24_v29  ;;  %659 = vmatmul.mubr.msk.f32.gmra.mrb[18].mxu1 %vm48_vm4, %v37_v30 }
  0x34   :  { %622 = vmatprep.mubr.msk.f32.mxu0 %vm788_vm0, %v789_v6  ;;  %661 = vmatprep.mubr.msk.f32.mxu1 %vm788_vm0, %v789_v6 }
  0x37   :  { %623 = vmatmul.mubr.msk.f32.gmra.mrb[20].mxu0 %vm48_vm4, %v25_v31  ;;  %662 = vmatmul.mubr.msk.f32.gmra.mrb[20].mxu1 %vm48_vm4, %v38_v32 }
  0x38   :  { %625 = vmatprep.mubr.msk.f32.mxu0 %vm788_vm0, %v789_v6  ;;  %664 = vmatprep.mubr.msk.f32.mxu1 %vm788_vm0, %v789_v6 }
  0x3b   :  { %626 = vmatmul.mubr.msk.f32.gmra.mrb[22].mxu0 %vm48_vm4, %v26_v33  ;;  %665 = vmatmul.mubr.msk.f32.gmra.mrb[22].mxu1 %vm48_vm4, %v39_v34 }
  0x3c   :  { %628 = vmatprep.mubr.msk.f32.mxu0 %vm788_vm0, %v789_v6 }
  0x3f   :  { %629 = vmatmul.mubr.msk.f32.gmra.mrb[24].mxu0 %vm48_vm4, %v27_v35 }
  0xe2   :  { %v194_v37 = vpop.f32.mrb[0].mxu0  ;;  %v259_v38 = vpop.f32.mrb[0].mxu1 }
  0xe3   :  { %v195_v39 = vadd.f32 %v194_v37, %v982_v36  ;;  %v594_v40 = vpop.f32.mrb[1].mxu0  ;;  %v260_v41 = vadd.f32 %v259_v38, %v982_v36  ;;  %v633_v42 = vpop.f32.mrb[1].mxu1 }
  0xe5   :  { %v524_v43 = vmul.f32 -1.442695, %v195_v39  ;;  %v537_v44 = vmul.f32 -1.442695, %v260_v41 }
  0xe6   :  { %v199_v45 = vpop.f32.mrb[2].mxu0  ;;  %v264_v46 = vpop.f32.mrb[2].mxu1 }
  0xe7   :  { %687 = vpow2.f32 %v524_v43  ;;  %v200_v47 = vadd.f32 %v199_v45, %v982_v36  ;;  %v597_v48 = vpop.f32.mrb[3].mxu0  ;;  %v265_v49 = vadd.f32 %v264_v46, %v982_v36  ;;  %v636_v50 = vpop.f32.mrb[3].mxu1 }
  0xe8   :  { %689 = vpow2.f32 %v537_v44 }
  0xe9   :  { %v525_v51 = vmul.f32 -1.442695, %v200_v47  ;;  %v538_v52 = vmul.f32 -1.442695, %v265_v49 }
  0xea   :  { %v204_v53 = vpop.f32.mrb[4].mxu0  ;;  %v269_v54 = vpop.f32.mrb[4].mxu1 }
  0xeb   :  { %691 = vpow2.f32 %v525_v51  ;;  %v205_v55 = vadd.f32 %v204_v53, %v982_v36  ;;  %v600_v56 = vpop.f32.mrb[5].mxu0  ;;  %v270_v57 = vadd.f32 %v269_v54, %v982_v36  ;;  %v639_v58 = vpop.f32.mrb[5].mxu1 }
  0xec   :  { %693 = vpow2.f32 %v538_v52 }
  0xed   :  { %v526_v59 = vmul.f32 -1.442695, %v205_v55  ;;  %v539_v60 = vmul.f32 -1.442695, %v270_v57 }
  0xee   :  { %v209_v61 = vpop.f32.mrb[6].mxu0  ;;  %v274_v62 = vpop.f32.mrb[6].mxu1 }
  0xef   :  { %695 = vpow2.f32 %v526_v59  ;;  %v210_v63 = vadd.f32 %v209_v61, %v982_v36  ;;  %v603_v0 = vpop.f32.mrb[7].mxu0  ;;  %v275_v1 = vadd.f32 %v274_v62, %v982_v36  ;;  %v642_v2 = vpop.f32.mrb[7].mxu1 }
  0xf0   :  { %697 = vpow2.f32 %v539_v60 }
  0xf1   :  { %v688_v3 = vpop.eup %687  ;;  %v527_v4 = vmul.f32 -1.442695, %v210_v63  ;;  %v540_v7 = vmul.f32 -1.442695, %v275_v1 }
  0xf2   :  { %v690_v5 = vpop.eup %689  ;;  %v393_v6 = vadd.f32 1.0, %v688_v3  ;;  %v214_v8 = vpop.f32.mrb[8].mxu0 }
  0xf3   :  { %v279_v9 = vpop.f32.mrb[8].mxu1  ;;  %v406_v10 = vadd.f32 1.0, %v690_v5  ;;  %699 = vpow2.f32 %v527_v4  ;;  %v215_v11 = vadd.f32 %v214_v8, %v982_v36  ;;  %v606_v12 = vpop.f32.mrb[9].mxu0 }
  0xf4   :  { %v280_v13 = vadd.f32 %v279_v9, %v982_v36  ;;  %v645_v14 = vpop.f32.mrb[9].mxu1  ;;  %701 = vrcp.f32 %v393_v6 }
  0xf5   :  { %v692_v15 = vpop.eup %691  ;;  %703 = vrcp.f32 %v406_v10  ;;  %v528_v16 = vmul.f32 -1.442695, %v215_v11 }
  0xf6   :  { %v694_v17 = vpop.eup %693  ;;  %v394_v18 = vadd.f32 1.0, %v692_v15  ;;  %705 = vpow2.f32 %v540_v7  ;;  %v541_v19 = vmul.f32 -1.442695, %v280_v13  ;;  %v219_v20 = vpop.f32.mrb[10].mxu0 }
  0xf7   :  { %v284_v21 = vpop.f32.mrb[10].mxu1  ;;  %v407_v22 = vadd.f32 1.0, %v694_v17  ;;  %707 = vpow2.f32 %v528_v16  ;;  %v220_v23 = vadd.f32 %v219_v20, %v982_v36  ;;  %v609_v24 = vpop.f32.mrb[11].mxu0 }
  0xf8   :  { %v285_v25 = vadd.f32 %v284_v21, %v982_v36  ;;  %v648_v26 = vpop.f32.mrb[11].mxu1  ;;  %709 = vrcp.f32 %v394_v18 }
  0xf9   :  { %v696_v27 = vpop.eup %695  ;;  %711 = vrcp.f32 %v407_v22  ;;  %v529_v28 = vmul.f32 -1.442695, %v220_v23 }
  0xfa   :  { %v698_v29 = vpop.eup %697  ;;  %v395_v30 = vadd.f32 1.0, %v696_v27  ;;  %713 = vpow2.f32 %v541_v19  ;;  %v542_v31 = vmul.f32 -1.442695, %v285_v25  ;;  %v224_v32 = vpop.f32.mrb[12].mxu0 }
  0xfb   :  { %v289_v33 = vpop.f32.mrb[12].mxu1  ;;  %v408_v34 = vadd.f32 1.0, %v698_v29  ;;  %715 = vpow2.f32 %v529_v28  ;;  %v225_v35 = vadd.f32 %v224_v32, %v982_v36  ;;  %v612_v37 = vpop.f32.mrb[13].mxu0 }
  0xfc   :  { %v290_v38 = vadd.f32 %v289_v33, %v982_v36  ;;  %v651_v39 = vpop.f32.mrb[13].mxu1  ;;  %717 = vrcp.f32 %v395_v30 }
  0xfd   :  { %v700_v40 = vpop.eup %699  ;;  %719 = vrcp.f32 %v408_v34  ;;  %v530_v41 = vmul.f32 -1.442695, %v225_v35 }
  0xfe   :  { %v543_v42 = vmul.f32 -1.442695, %v290_v38  ;;  %v702_v43 = vpop.eup %701  ;;  %v396_v44 = vadd.f32 1.0, %v700_v40  ;;  %721 = vpow2.f32 %v542_v31  ;;  %v229_v45 = vpop.f32.mrb[14].mxu0 }
  0xff   :  { %v294_v46 = vpop.f32.mrb[14].mxu1  ;;  %v704_v47 = vpop.eup %703  ;;  %469 = vst.msk [vmem:[%s1112_s3] sm:$0xff] %vm468_vm5, %v702_v43  ;;  %723 = vpow2.f32 %v530_v41  ;;  %v230_v48 = vadd.f32 %v229_v45, %v982_v36 }
 0x100   :  { %v615_v49 = vpop.f32.mrb[15].mxu0  ;;  %v295_v50 = vadd.f32 %v294_v46, %v982_v36  ;;  %v654_v51 = vpop.f32.mrb[15].mxu1  ;;  %482 = vst.msk [vmem:[%s1112_s3 + $0x68] sm:$0xff] %vm468_vm5, %v704_v47  ;;  %725 = vrcp.f32 %v396_v44 }
 0x101   :  { %v706_v52 = vpop.eup %705  ;;  %727 = vpow2.f32 %v543_v42  ;;  %v531_v55 = vmul.f32 -1.442695, %v230_v48 }
 0x102   :  { %v708_v53 = vpop.eup %707  ;;  %v409_v54 = vadd.f32 1.0, %v706_v52  ;;  %v544_v58 = vmul.f32 -1.442695, %v295_v50  ;;  %v234_v59 = vpop.f32.mrb[16].mxu0 }
 0x103   :  { %v710_v56 = vpop.eup %709  ;;  %v397_v57 = vadd.f32 1.0, %v708_v53  ;;  %v299_v60 = vpop.f32.mrb[16].mxu1  ;;  %v235_v62 = vadd.f32 %v234_v59, %v982_v36 }
 0x104   :  { %v712_v61 = vpop.eup %711  ;;  %470 = vst.msk [vmem:[%s1112_s3 + $0x8] sm:$0xff] %vm468_vm5, %v710_v56  ;;  %729 = vrcp.f32 %v409_v54  ;;  %v618_v63 = vpop.f32.mrb[17].mxu0  ;;  %v300_v0 = vadd.f32 %v299_v60, %v982_v36 }
 0x105   :  { %v657_v1 = vpop.f32.mrb[17].mxu1  ;;  %v714_v2 = vpop.eup %713  ;;  %483 = vst.msk [vmem:[%s1112_s3 + $0x70] sm:$0xff] %vm468_vm5, %v712_v61  ;;  %731 = vrcp.f32 %v397_v57  ;;  %v532_v5 = vmul.f32 -1.442695, %v235_v62 }
 0x106   :  { %v716_v3 = vpop.eup %715  ;;  %v410_v4 = vadd.f32 1.0, %v714_v2  ;;  %733 = vpow2.f32 %v531_v55  ;;  %v545_v8 = vmul.f32 -1.442695, %v300_v0  ;;  %v239_v9 = vpop.f32.mrb[18].mxu0 }
 0x107   :  { %v718_v6 = vpop.eup %717  ;;  %v398_v7 = vadd.f32 1.0, %v716_v3  ;;  %735 = vpow2.f32 %v544_v58  ;;  %v304_v10 = vpop.f32.mrb[18].mxu1  ;;  %v240_v12 = vadd.f32 %v239_v9, %v982_v36 }
 0x108   :  { %v720_v11 = vpop.eup %719  ;;  %471 = vst.msk [vmem:[%s1112_s3 + $0x10] sm:$0xff] %vm468_vm5, %v718_v6  ;;  %737 = vrcp.f32 %v410_v4  ;;  %v621_v13 = vpop.f32.mrb[19].mxu0  ;;  %v305_v14 = vadd.f32 %v304_v10, %v982_v36 }
 0x109   :  { %v660_v15 = vpop.f32.mrb[19].mxu1  ;;  %v722_v16 = vpop.eup %721  ;;  %484 = vst.msk [vmem:[%s1112_s3 + $0x78] sm:$0xff] %vm468_vm5, %v720_v11  ;;  %739 = vrcp.f32 %v398_v7  ;;  %v533_v19 = vmul.f32 -1.442695, %v240_v12 }
 0x10a   :  { %v724_v17 = vpop.eup %723  ;;  %v411_v18 = vadd.f32 1.0, %v722_v16  ;;  %741 = vpow2.f32 %v532_v5  ;;  %v244_v22 = vpop.f32.mrb[20].mxu0  ;;  %v546_v25 = vmul.f32 -1.442695, %v305_v14 }
 0x10b   :  { %v726_v20 = vpop.eup %725  ;;  %v399_v21 = vadd.f32 1.0, %v724_v17  ;;  %743 = vpow2.f32 %v545_v8  ;;  %v309_v23 = vpop.f32.mrb[20].mxu1  ;;  %v245_v26 = vadd.f32 %v244_v22, %v982_v36 }
 0x10c   :  { %v728_v24 = vpop.eup %727  ;;  %472 = vst.msk [vmem:[%s1112_s3 + $0x18] sm:$0xff] %vm468_vm5, %v726_v20  ;;  %745 = vrcp.f32 %v411_v18  ;;  %v624_v27 = vpop.f32.mrb[21].mxu0  ;;  %v310_v28 = vadd.f32 %v309_v23, %v982_v36 }
 0x10d   :  { %v663_v29 = vpop.f32.mrb[21].mxu1  ;;  %747 = vrcp.f32 %v399_v21  ;;  %v412_v30 = vadd.f32 1.0, %v728_v24  ;;  %v534_v32 = vmul.f32 -1.442695, %v245_v26 }
 0x10e   :  { %v730_v31 = vpop.eup %729  ;;  %749 = vpow2.f32 %v533_v19  ;;  %v547_v33 = vmul.f32 -1.442695, %v310_v28  ;;  %v249_v35 = vpop.f32.mrb[22].mxu0 }
 0x10f   :  { %v732_v34 = vpop.eup %731  ;;  %485 = vst.msk [vmem:[%s1112_s3 + $0x80] sm:$0xff] %vm468_vm5, %v730_v31  ;;  %751 = vrcp.f32 %v412_v30  ;;  %v314_v37 = vpop.f32.mrb[22].mxu1  ;;  %v250_v39 = vadd.f32 %v249_v35, %v982_v36 }
 0x110   :  { %v734_v38 = vpop.eup %733  ;;  %473 = vst.msk [vmem:[%s1112_s3 + $0x20] sm:$0xff] %vm468_vm5, %v732_v34  ;;  %753 = vpow2.f32 %v546_v25  ;;  %v627_v40 = vpop.f32.mrb[23].mxu0  ;;  %v315_v41 = vadd.f32 %v314_v37, %v982_v36 }
 0x111   :  { %v666_v42 = vpop.f32.mrb[23].mxu1  ;;  %v736_v43 = vpop.eup %735  ;;  %v400_v44 = vadd.f32 1.0, %v734_v38  ;;  %755 = vpow2.f32 %v534_v32  ;;  %v535_v47 = vmul.f32 -1.442695, %v250_v39 }
 0x112   :  { %v738_v45 = vpop.eup %737  ;;  %v413_v46 = vadd.f32 1.0, %v736_v43  ;;  %757 = vpow2.f32 %v547_v33  ;;  %v548_v48 = vmul.f32 -1.442695, %v315_v41  ;;  %v254_v50 = vpop.f32.mrb[24].mxu0 }
 0x113   :  { %v740_v49 = vpop.eup %739  ;;  %486 = vst.msk [vmem:[%s1112_s3 + $0x88] sm:$0xff] %vm468_vm5, %v738_v45  ;;  %759 = vrcp.f32 %v400_v44  ;;  %v255_v52 = vadd.f32 %v254_v50, %v982_v36  ;;  %v630_v53 = vpop.f32.mrb[25].mxu0 }
 0x114   :  { %v742_v51 = vpop.eup %741  ;;  %474 = vst.msk [vmem:[%s1112_s3 + $0x28] sm:$0xff] %vm468_vm5, %v740_v49  ;;  %761 = vrcp.f32 %v413_v46 }
 0x115   :  { %v744_v54 = vpop.eup %743  ;;  %v401_v55 = vadd.f32 1.0, %v742_v51  ;;  %763 = vpow2.f32 %v535_v47  ;;  %v536_v58 = vmul.f32 -1.442695, %v255_v52 }
 0x116   :  { %v746_v56 = vpop.eup %745  ;;  %v414_v57 = vadd.f32 1.0, %v744_v54  ;;  %765 = vpow2.f32 %v548_v48 }
 0x117   :  { %v748_v59 = vpop.eup %747  ;;  %487 = vst.msk [vmem:[%s1112_s3 + $0x90] sm:$0xff] %vm468_vm5, %v746_v56  ;;  %767 = vrcp.f32 %v401_v55 }
 0x118   :  { %v750_v60 = vpop.eup %749  ;;  %475 = vst.msk [vmem:[%s1112_s3 + $0x30] sm:$0xff] %vm468_vm5, %v748_v59  ;;  %769 = vrcp.f32 %v414_v57 }
 0x119   :  { %v752_v36 = vpop.eup %751  ;;  %v402_v61 = vadd.f32 1.0, %v750_v60  ;;  %771 = vpow2.f32 %v536_v58 }
 0x11a   :  { %v754_v62 = vpop.eup %753  ;;  %488 = vst.msk [vmem:[%s1112_s3 + $0x98] sm:$0xff] %vm468_vm5, %v752_v36 }
 0x11b   :  { %v756_v63 = vpop.eup %755  ;;  %773 = vrcp.f32 %v402_v61  ;;  %v415_v0 = vadd.f32 1.0, %v754_v62 }
 0x11c   :  { %v758_v1 = vpop.eup %757  ;;  %v403_v2 = vadd.f32 1.0, %v756_v63 }
 0x11d   :  { %v760_v3 = vpop.eup %759  ;;  %775 = vrcp.f32 %v415_v0  ;;  %v416_v4 = vadd.f32 1.0, %v758_v1 }
 0x11e   :  { %v762_v5 = vpop.eup %761  ;;  %476 = vst.msk [vmem:[%s1112_s3 + $0x38] sm:$0xff] %vm468_vm5, %v760_v3  ;;  %777 = vrcp.f32 %v403_v2 }
 0x11f   :  { %v764_v6 = vpop.eup %763  ;;  %489 = vst.msk [vmem:[%s1112_s3 + $0xa0] sm:$0xff] %vm468_vm5, %v762_v5  ;;  %779 = vrcp.f32 %v416_v4 }
 0x120   :  { %v766_v7 = vpop.eup %765  ;;  %v404_v8 = vadd.f32 1.0, %v764_v6 }
 0x121   :  { %v768_v9 = vpop.eup %767  ;;  %v417_v10 = vadd.f32 1.0, %v766_v7 }
 0x122   :  { %v770_v11 = vpop.eup %769  ;;  %477 = vst.msk [vmem:[%s1112_s3 + $0x40] sm:$0xff] %vm468_vm5, %v768_v9  ;;  %781 = vrcp.f32 %v404_v8 }
 0x123   :  { %v772_v12 = vpop.eup %771  ;;  %490 = vst.msk [vmem:[%s1112_s3 + $0xa8] sm:$0xff] %vm468_vm5, %v770_v11  ;;  %783 = vrcp.f32 %v417_v10 }
 0x124   :  { %v405_v13 = vadd.f32 1.0, %v772_v12 }
 0x125   :  { %v774_v14 = vpop.eup %773 }
 0x126   :  { %478 = vst.msk [vmem:[%s1112_s3 + $0x48] sm:$0xff] %vm468_vm5, %v774_v14  ;;  %785 = vrcp.f32 %v405_v13 }
 0x127   :  { %v776_v15 = vpop.eup %775 }
 0x128   :  { %v778_v16 = vpop.eup %777  ;;  %491 = vst.msk [vmem:[%s1112_s3 + $0xb0] sm:$0xff] %vm468_vm5, %v776_v15 }
 0x129   :  { %v780_v17 = vpop.eup %779  ;;  %479 = vst.msk [vmem:[%s1112_s3 + $0x50] sm:$0xff] %vm468_vm5, %v778_v16 }
 0x12a   :  { %492 = vst.msk [vmem:[%s1112_s3 + $0xb8] sm:$0xff] %vm468_vm5, %v780_v17 }
 0x12c   :  { %v782_v18 = vpop.eup %781 }
 0x12d   :  { %v784_v19 = vpop.eup %783  ;;  %480 = vst.msk [vmem:[%s1112_s3 + $0x58] sm:$0xff] %vm468_vm5, %v782_v18 }
 0x12e   :  { %493 = vst.msk [vmem:[%s1112_s3 + $0xc0] sm:$0xff] %vm468_vm5, %v784_v19 }
 0x130   :  { %v786_v20 = vpop.eup %785 }
 0x131   :  { %481 = vst.msk [vmem:[%s1112_s3 + $0x60] sm:$0xff] %vm468_vm5, %v786_v20 }

</bundles_post_ra>
